<compile_context>
chip_gen: v5e
topology: v5e:2x2
jax: 0.10.0
libtpu: 0.0.40
codegen_flags: <defaults>
</compile_context>

<pallas_src>
import jax
import jax.numpy as jnp
from jax.experimental import pallas as pl
from jax.experimental.pallas import tpu as pltpu


# ----------------------------------------------------------------------------
# Small helpers.
# ----------------------------------------------------------------------------
def _pick_divisor(dim, target):
    """Largest divisor of `dim` <= target (no alignment requirement)."""
    t = min(dim, max(1, target))
    while dim % t:
        t -= 1
    return t


def _pick_aligned_tile(dim, target, align):
    """Largest divisor of `dim` <= target that is a multiple of `align`.
    Falls back to the full dim (always a legal block) if none exists."""
    t = min(dim, target)
    while t >= align:
        if dim % t == 0 and t % align == 0:
            return t
        t -= 1
    return dim


def _vmem_cap_bytes():
    try:
        return int(pltpu.get_tpu_info().vmem_capacity_bytes)
    except Exception:
        return 64 * 1024 * 1024          # conservative: v7x per-core VMEM


def _vmem_limit(need_bytes):
    """Explicit scoped-VMEM budget: actual demand + margin, capped at 90% of
    physical VMEM (64 MiB on v7x, 128 MiB on v5e/v6e)."""
    cap = _vmem_cap_bytes()
    lim = max(int(need_bytes * 1.5) + (4 << 20), 32 << 20)
    return int(min(lim, int(cap * 0.9)))


def _sigmoid(x):
    # sigmoid(x) = 0.5*tanh(0.5*x) + 0.5 : one EUP op per element instead of
    # exp + reciprocal on the serial recurrence critical path.
    return 0.5 * jnp.tanh(0.5 * x) + 0.5


# ----------------------------------------------------------------------------
# Tiled GEMM + bias kernel: (rows, K) @ (K, V) + b -> (rows, V), f32 acc.
# Shared by the hoisted input projection and the FC layer.  The bf16 operand
# cast happens inside the kernel (hidden under the MXU); weights are already
# bf16 (pre-cast once at init).
# ----------------------------------------------------------------------------
def matmul_bias_kernel(x_ref, w_ref, b_ref, o_ref):
    acc = jnp.dot(x_ref[...].astype(jnp.bfloat16), w_ref[...],
                  preferred_element_type=jnp.float32)
    o_ref[...] = (acc + b_ref[...]).astype(o_ref.dtype)


def matmul_bias(x, w, b, *, out_dtype=jnp.float32, row_tile=256, col_tile=512):
    """x: (N, K) f32/bf16, w: (K, V) bf16, b: (1, V) f32 -> (N, V) out_dtype."""
    N, K = x.shape
    V = w.shape[1]
    tn = _pick_aligned_tile(N, row_tile, 8)
    tv = _pick_aligned_tile(V, col_tile, 128)
    o_bytes = 2 if out_dtype in (jnp.bfloat16, jnp.float16) else 4
    need = 2 * (tn * K * x.dtype.itemsize + K * tv * 2 + tv * 4
                + tn * tv * o_bytes)
    return pl.pallas_call(
        matmul_bias_kernel,
        out_shape=jax.ShapeDtypeStruct((N, V), out_dtype),
        grid_spec=pltpu.PrefetchScalarGridSpec(
            num_scalar_prefetch=0,
            grid=(N // tn, V // tv),
            in_specs=[
                pl.BlockSpec((tn, K), lambda i, j: (i, 0)),
                pl.BlockSpec((K, tv), lambda i, j: (0, j)),
                pl.BlockSpec((1, tv), lambda i, j: (0, j)),
            ],
            out_specs=pl.BlockSpec((tn, tv), lambda i, j: (i, j)),
        ),
        compiler_params=pltpu.CompilerParams(
            dimension_semantics=("parallel", "parallel"),
            vmem_limit_bytes=_vmem_limit(need)),
    )(x, w, b)


# ----------------------------------------------------------------------------
# FC directly from the TIME-major hidden sequence: reads (T, B, H) blocks via
# a squeezed batch dim and writes batch-major (B*T, V) rows through the out
# index_map -- no materialized transpose / flatten pass in XLA.
# ----------------------------------------------------------------------------
def fc_from_timemajor(h_seq, w, b, *, time_tile=256, col_tile=1024,
                      out_dtype=jnp.float32):
    T, B, H = h_seq.shape
    V = w.shape[1]
    tt = _pick_aligned_tile(T, time_tile, 8)
    tv = _pick_aligned_tile(V, col_tile, 128)
    if tt % 8 == 0:                       # out rows stay sublane-aligned
        nt = T // tt
        o_bytes = 2 if out_dtype in (jnp.bfloat16, jnp.float16) else 4
        need = 2 * (tt * H * h_seq.dtype.itemsize + H * tv * 2 + tv * 4
                    + tt * tv * o_bytes)
        try:
            fn = pl.pallas_call(
                matmul_bias_kernel,
                out_shape=jax.ShapeDtypeStruct((B * T, V), out_dtype),
                grid_spec=pltpu.PrefetchScalarGridSpec(
                    num_scalar_prefetch=0,
                    grid=(B, nt, V // tv),
                    in_specs=[
                        pl.BlockSpec((tt, pl.Squeezed(), H),
                                     lambda bi, tc, vj: (tc, bi, 0)),
                        pl.BlockSpec((H, tv), lambda bi, tc, vj: (0, vj)),
                        pl.BlockSpec((1, tv), lambda bi, tc, vj: (0, vj)),
                    ],
                    out_specs=pl.BlockSpec(
                        (tt, tv), lambda bi, tc, vj: (bi * nt + tc, vj)),
                ),
                compiler_params=pltpu.CompilerParams(
                    dimension_semantics=("parallel", "parallel", "parallel"),
                    vmem_limit_bytes=_vmem_limit(need)),
            )
            return fn(h_seq, w, b)
        except Exception:
            pass                           # fall back to transpose path
    # Fallback: materialize batch-major flatten, then the plain tiled GEMM.
    flat = jnp.transpose(h_seq, (1, 0, 2)).reshape(B * T, H)
    return matmul_bias(flat, w, b, out_dtype=out_dtype,
                       row_tile=time_tile, col_tile=col_tile)


# ----------------------------------------------------------------------------
# Recurrent LSTM kernel.  Grid = (batch tiles [parallel], time chunks
# [arbitrary]).  Per step: h @ W_hh (bf16 MXU, f32 acc) + precomputed gate
# pre-activations; gate nonlinearities and the h/c state stay f32 in VMEM
# scratch.  Gate order matches PyTorch nn.LSTM: [i, f, g, o].
# ----------------------------------------------------------------------------
def lstm_recurrent_kernel(gates_ref, w_hh_ref, h0_ref, c0_ref,
                          out_ref, hT_ref, cT_ref, h_sc, c_sc):
    chunk = pl.program_id(1)

    @pl.when(chunk == 0)
    def _():
        h_sc[...] = h0_ref[...]
        c_sc[...] = c0_ref[...]

    H = h_sc.shape[-1]
    Tc = gates_ref.shape[0]
    w_hh = w_hh_ref[...]                       # (H, 4H) bf16, grid-invariant

    def step(t, carry):
        # TODO(synk): push W_hh into MXU weight registers once per chunk
        # (pltpu.matmul_push_rhs / matmul_acc_lhs / matmul_pop) when B << H.
        gates = (gates_ref[t].astype(jnp.float32) +
                 jnp.dot(h_sc[...].astype(jnp.bfloat16), w_hh,
                         preferred_element_type=jnp.float32))   # (tb, 4H) f32
        i_g = _sigmoid(gates[:, 0 * H:1 * H])
        f_g = _sigmoid(gates[:, 1 * H:2 * H])
        g_g = jnp.tanh(gates[:, 2 * H:3 * H])
        o_g = _sigmoid(gates[:, 3 * H:4 * H])
        c_new = f_g * c_sc[...] + i_g * g_g
        h_new = o_g * jnp.tanh(c_new)
        c_sc[...] = c_new
        h_sc[...] = h_new
        out_ref[t] = h_new.astype(out_ref.dtype)
        return carry

    # Bounded unroll: amortizes loop overhead without blowing vreg live ranges.
    jax.lax.fori_loop(0, Tc, step, 0, unroll=min(4, Tc))

    @pl.when(chunk == pl.num_programs(1) - 1)
    def _():
        hT_ref[...] = h_sc[...]
        cT_ref[...] = c_sc[...]


def lstm_recurrent(gates_pre, w_hh, h0, c0, *, time_chunk=16, batch_tile=None):
    """gates_pre: (T, B, 4H) bf16 (precomputed X @ W_ih + b), w_hh: (H,4H) bf16.
    Returns (h_seq (T,B,H) bf16, h_T (B,H) f32, c_T (B,H) f32)."""
    T, B, G = gates_pre.shape
    H = h0.shape[-1]
    Tc = _pick_divisor(T, time_chunk)
    if batch_tile is None:
        tb = B                       # single batch tile (small-B default)
    else:
        tb = _pick_divisor(B, batch_tile)
        if tb % 8 != 0:
            tb = B
    nb, nc = B // tb, T // Tc

    need = (2 * Tc * tb * G * 2          # gates blocks (bf16, double-buffered)
            + 1 * H * G * 2              # W_hh (bf16, single-buffered)
            + 2 * 2 * tb * H * 4         # h0 / c0 blocks
            + 2 * Tc * tb * H * 2        # hidden-seq out blocks (bf16)
            + 2 * 2 * tb * H * 4         # hT / cT blocks
            + 2 * tb * H * 4)            # f32 state scratch

    def build(w_hh_spec):
        return pl.pallas_call(
            lstm_recurrent_kernel,
            out_shape=(jax.ShapeDtypeStruct((T, B, H), jnp.bfloat16),
                       jax.ShapeDtypeStruct((B, H), jnp.float32),
                       jax.ShapeDtypeStruct((B, H), jnp.float32)),
            grid_spec=pltpu.PrefetchScalarGridSpec(
                num_scalar_prefetch=0,
                grid=(nb, nc),
                in_specs=[
                    pl.BlockSpec((Tc, tb, G), lambda bi, c: (c, bi, 0)),
                    w_hh_spec,
                    pl.BlockSpec((tb, H), lambda bi, c: (bi, 0)),
                    pl.BlockSpec((tb, H), lambda bi, c: (bi, 0)),
                ],
                out_specs=[
                    pl.BlockSpec((Tc, tb, H), lambda bi, c: (c, bi, 0)),
                    pl.BlockSpec((tb, H), lambda bi, c: (bi, 0)),
                    pl.BlockSpec((tb, H), lambda bi, c: (bi, 0)),
                ],
                scratch_shapes=[pltpu.VMEM((tb, H), jnp.float32),
                                pltpu.VMEM((tb, H), jnp.float32)],
            ),
            compiler_params=pltpu.CompilerParams(
                dimension_semantics=("parallel", "arbitrary"),
                vmem_limit_bytes=_vmem_limit(need)),
        )

    try:
        # W_hh is grid-invariant -> single-buffer it (saves an H*4H*2-byte
        # second copy; real headroom at H=1024 under v7x's 64 MiB VMEM).
        whh_spec = pl.BlockSpec((H, G), lambda bi, c: (0, 0),
                                pipeline_mode=pl.Buffered(1))
        return build(whh_spec)(gates_pre, w_hh, h0, c0)
    except Exception:
        # API/lowering variance around pipeline_mode: default double buffering.
        whh_spec = pl.BlockSpec((H, G), lambda bi, c: (0, 0))
        return build(whh_spec)(gates_pre, w_hh, h0, c0)


# ----------------------------------------------------------------------------
# Full hw2LSTM forward (eval-mode).
# ----------------------------------------------------------------------------
def hw2lstm_forward(params, x_tokens, hidden, *, time_chunk=16,
                    batch_tile=None):
    """x_tokens: (B, T) int32.  hidden = (h0, c0), each (n_layers, B, H)."""
    h0_all, c0_all = hidden
    B, T = x_tokens.shape

    # Pad batch to a multiple of 8 (sublane alignment); padded rows are
    # computed with zero state / token 0 and dropped at the end.
    Bp = max(8, -(-B // 8) * 8)
    if Bp != B:
        x_tokens = jnp.pad(x_tokens, ((0, Bp - B), (0, 0)))
        h0_all = jnp.pad(h0_all, ((0, 0), (0, Bp - B), (0, 0)))
        c0_all = jnp.pad(c0_all, ((0, 0), (0, Bp - B), (0, 0)))

    # Embedding gather (glue) directly into TIME-major layout; embedding table
    # is already bf16.  Eval-mode dropout is identity.
    layer_in = jnp.take(params["embedding"], x_tokens.T, axis=0)  # (T, Bp, E)

    h_finals, c_finals = [], []
    for l, lp in enumerate(params["lstm_layers"]):
        Tt, Bb, Ein = layer_in.shape
        H = lp["w_hh"].shape[0]
        # (1) Hoisted input projection: one lane-dense GEMM over all steps,
        #     bf16 output (halves the dominant HBM round-trip).
        gates_pre = matmul_bias(layer_in.reshape(Tt * Bb, Ein),
                                lp["w_ih"], lp["b"],
                                out_dtype=jnp.bfloat16)           # (T*Bp, 4H)
        gates_pre = gates_pre.reshape(Tt, Bb, 4 * H)
        # (2) Sequential recurrence: only h @ W_hh + gate math per step.
        layer_in, hT, cT = lstm_recurrent(
            gates_pre, lp["w_hh"], h0_all[l], c0_all[l],
            time_chunk=time_chunk, batch_tile=batch_tile)
        h_finals.append(hT)
        c_finals.append(cT)
        # TODO(synk): training-mode inter-layer dropout not implemented.

    # (3) FC straight from the time-major hidden seq, writing batch-major
    #     (B*T, V) rows -- matches out.contiguous().view(-1, H) @ fc.
    logits = fc_from_timemajor(layer_in, params["fc_w"], params["fc_b"])

    if Bp != B:
        logits = logits[: B * T]
        h_finals = [h[:B] for h in h_finals]
        c_finals = [c[:B] for c in c_finals]
    return logits, (jnp.stack(h_finals, 0), jnp.stack(c_finals, 0))


# ----------------------------------------------------------------------------
# Deterministic parameter init (mirrors init_weights for the RNN: weights
# ~ U(-0.05, 0.05), RNN biases = 0).  MXU weights are pre-cast to bf16 ONCE.
# ----------------------------------------------------------------------------
def init_params(key, vocab_size, embedding_dim, hidden_dim, n_layers):
    keys = jax.random.split(key, 2 + 2 * n_layers)
    bound = 1.0 / (hidden_dim ** 0.5)
    params = {
        "embedding": jax.random.normal(
            keys[0], (vocab_size, embedding_dim),
            jnp.float32).astype(jnp.bfloat16),
        "lstm_layers": [],
        "fc_w": jax.random.uniform(
            keys[1], (hidden_dim, vocab_size), jnp.float32,
            -bound, bound).astype(jnp.bfloat16),
        "fc_b": jnp.zeros((1, vocab_size), jnp.float32),
    }
    for l in range(n_layers):
        in_dim = embedding_dim if l == 0 else hidden_dim
        k_ih, k_hh = keys[2 + 2 * l], keys[3 + 2 * l]
        # Stored pre-transposed: (in_dim, 4H) and (H, 4H); gate order i,f,g,o.
        w_ih = jax.random.uniform(k_ih, (in_dim, 4 * hidden_dim),
                                  jnp.float32, -0.05, 0.05).astype(jnp.bfloat16)
        w_hh = jax.random.uniform(k_hh, (hidden_dim, 4 * hidden_dim),
                                  jnp.float32, -0.05, 0.05).astype(jnp.bfloat16)
        # NOTE: combined bias b = b_ih + b_hh (zero-init here); nonzero
        # checkpoint biases must be pre-summed before loading.
        b = jnp.zeros((1, 4 * hidden_dim), jnp.float32)
        params["lstm_layers"].append({"w_ih": w_ih, "w_hh": w_hh, "b": b})
    return params


# ----------------------------------------------------------------------------
# Pure-JAX reference (same bf16-MXU-operand / f32-accumulation / bf16
# intermediate scheme as the kernels).
# ----------------------------------------------------------------------------
def reference_forward(params, x_tokens, hidden):
    h0_all, c0_all = hidden
    layer_in = jnp.take(params["embedding"], x_tokens, axis=0)    # (B, T, E)
    h_fs, c_fs = [], []
    for l, lp in enumerate(params["lstm_layers"]):
        H = lp["w_hh"].shape[0]
        gp = (jnp.dot(layer_in.astype(jnp.bfloat16), lp["w_ih"],
                      preferred_element_type=jnp.float32)
              + lp["b"]).astype(jnp.bfloat16)                     # (B, T, 4H)

        def cell(carry, g_t, w_hh=lp["w_hh"], H=H):
            h, c = carry
            g = g_t.astype(jnp.float32) + jnp.dot(
                h.astype(jnp.bfloat16), w_hh,
                preferred_element_type=jnp.float32)
            i = jax.nn.sigmoid(g[:, 0 * H:1 * H])
            f = jax.nn.sigmoid(g[:, 1 * H:2 * H])
            gg = jnp.tanh(g[:, 2 * H:3 * H])
            o = jax.nn.sigmoid(g[:, 3 * H:4 * H])
            c_new = f * c + i * gg
            h_new = o * jnp.tanh(c_new)
            return (h_new, c_new), h_new.astype(jnp.bfloat16)

        (hT, cT), outs = jax.lax.scan(
            cell, (h0_all[l], c0_all[l]), jnp.transpose(gp, (1, 0, 2)))
        layer_in = jnp.transpose(outs, (1, 0, 2))                 # (B, T, H)
        h_fs.append(hT)
        c_fs.append(cT)
    H = layer_in.shape[-1]
    logits = (jnp.dot(layer_in.reshape(-1, H), params["fc_w"],
                      preferred_element_type=jnp.float32)
              + params["fc_b"])
    return logits, (jnp.stack(h_fs, 0), jnp.stack(c_fs, 0))


if __name__ == "__main__":
    # Small shapes consistent with the module.
    batch_size, seq_length = 4, 8
    hidden_dim, n_layers = 32, 2
    vocab_size, embedding_dim = 64, 16

    key = jax.random.PRNGKey(0)
    k_param, k_tok, k_h, k_c = jax.random.split(key, 4)

    params = init_params(k_param, vocab_size, embedding_dim,
                         hidden_dim, n_layers)
    x_tokens = jax.random.randint(k_tok, (batch_size, seq_length),
                                  0, vocab_size, jnp.int32)
    h0 = jax.random.normal(k_h, (n_layers, batch_size, hidden_dim), jnp.float32)
    c0 = jax.random.normal(k_c, (n_layers, batch_size, hidden_dim), jnp.float32)

    # Run eagerly (each pallas_call compiles on its own); this also lets the
    # transpose-free FC / single-buffered-W_hh paths fall back cleanly if the
    # installed jax build rejects their specs.
    logits, (hT, cT) = hw2lstm_forward(params, x_tokens, (h0, c0))
    jax.block_until_ready((logits, hT, cT))

    ref_logits, (ref_hT, ref_cT) = reference_forward(params, x_tokens, (h0, c0))
    assert logits.shape == (batch_size * seq_length, vocab_size)
    assert hT.shape == (n_layers, batch_size, hidden_dim)
    assert cT.shape == (n_layers, batch_size, hidden_dim)
    assert jnp.allclose(logits, ref_logits, atol=2e-2, rtol=2e-2)
    assert jnp.allclose(hT, ref_hT, atol=2e-2, rtol=2e-2)
    assert jnp.allclose(cT, ref_cT, atol=2e-2, rtol=2e-2)

    print("KERNEL_OK")
</pallas_src>

<mosaic_0001>
module attributes {stable_mosaic.version = 11 : i64} {
  func.func @matmul_bias_kernel(%arg0: i32, %arg1: i32, %arg2: memref<64x16xbf16, #tpu.memory_space<vmem>>, %arg3: memref<16x128xbf16, #tpu.memory_space<vmem>>, %arg4: memref<1x128xf32, #tpu.memory_space<vmem>>, %arg5: memref<64x128xbf16, #tpu.memory_space<vmem>>) attributes {dimension_semantics = [#tpu.dimension_semantics<parallel>, #tpu.dimension_semantics<parallel>], iteration_bounds = array<i64: 1, 1>, scalar_prefetch = 0 : i64, scratch_operands = 0 : i64, tpu.core_type = #tpu.core_type<tc>, window_params = [{transform_indices = @transform_0, window_bounds = array<i64: 64, 16>}, {transform_indices = @transform_1, window_bounds = array<i64: 16, 128>}, {transform_indices = @transform_2, window_bounds = array<i64: 1, 128>}, {transform_indices = @transform_3, window_bounds = array<i64: 64, 128>}]} {
    %c0 = arith.constant 0 : index
    %c0_0 = arith.constant 0 : index
    %0 = vector.load %arg2[%c0, %c0_0] : memref<64x16xbf16, #tpu.memory_space<vmem>>, vector<64x16xbf16>
    %c0_1 = arith.constant 0 : index
    %c0_2 = arith.constant 0 : index
    %1 = vector.load %arg3[%c0_1, %c0_2] : memref<16x128xbf16, #tpu.memory_space<vmem>>, vector<16x128xbf16>
    %cst = arith.constant dense<0.000000e+00> : vector<64x128xf32>
    %2 = tpu.matmul %0, %1, %cst {dimension_numbers = #tpu.dot_dimension_numbers<[1], [0], [0], [1], [0, 0, 1, 1], [], []>} : vector<64x16xbf16>, vector<16x128xbf16>, vector<64x128xf32> -> vector<64x128xf32>
    %c0_3 = arith.constant 0 : index
    %c0_4 = arith.constant 0 : index
    %3 = vector.load %arg4[%c0_3, %c0_4] : memref<1x128xf32, #tpu.memory_space<vmem>>, vector<1x128xf32>
    %4 = vector.broadcast %3 : vector<1x128xf32> to vector<64x128xf32>
    %5 = arith.addf %2, %4 : vector<64x128xf32>
    %6 = arith.truncf %5 : vector<64x128xf32> to vector<64x128xbf16>
    %c0_5 = arith.constant 0 : index
    %c0_6 = arith.constant 0 : index
    %7 = vector.load %arg5[%c0_5, %c0_6] : memref<64x128xbf16, #tpu.memory_space<vmem>>, vector<64x128xbf16>
    tpu.vector_store %arg5[%c0_5, %c0_6], %6 {strides = array<i32>} : memref<64x128xbf16, #tpu.memory_space<vmem>>, vector<64x128xbf16>,
    return
  }
  func.func @transform_0(%arg0: i32, %arg1: i32) -> (i32, i32) {
    %c0_i32 = arith.constant 0 : i32
    %c0_i32_0 = arith.constant 0 : i32
    return %arg0, %c0_i32 : i32, i32
  }
  func.func @transform_1(%arg0: i32, %arg1: i32) -> (i32, i32) {
    %c0_i32 = arith.constant 0 : i32
    %c0_i32_0 = arith.constant 0 : i32
    return %c0_i32, %arg1 : i32, i32
  }
  func.func @transform_2(%arg0: i32, %arg1: i32) -> (i32, i32) {
    %c0_i32 = arith.constant 0 : i32
    %c0_i32_0 = arith.constant 0 : i32
    return %c0_i32, %arg1 : i32, i32
  }
  func.func @transform_3(%arg0: i32, %arg1: i32) -> (i32, i32) {
    %c0_i32 = arith.constant 0 : i32
    return %arg0, %arg1 : i32, i32
  }
}

</mosaic_0001>

<bundles_post_ra>
// kernel: tpu_custom_call.1
= control target key start
LH: loop header
LB: loop body
LE: loop exit
PB: predicated region body
PF: predicated region fallthrough
CT: control target
= control target key end

     0   :  { %vm56_vm0 = vcmask 130048   ;;  %s261_s0 = inlined_call_operand.vmem [shape: bf16[64,16], index: 0, kind: input, shape index: {}]   ;;  %s262_s1 = inlined_call_operand.vmem [shape: bf16[16,128], index: 1, kind: input, shape index: {}]   ;;  %s263_s2 = inlined_call_operand.vmem [shape: f32[1,128], index: 2, kind: input, shape index: {}]   ;;  %s264_s3 = inlined_call_operand.hbm [shape: bf16[64,128], index: 3, kind: output, shape index: {}]  }
   0x1   :  { %v160_v0 = vld [vmem:[%s262_s1] sm:$0xff]  ;;  %v157_v2 = vld [vmem:[%s261_s0 + $0x8] sm:$0xff]  ;;  %v158_v3 = vld [vmem:[%s261_s0 + $0x10] sm:$0xff] }
   0x2   :  { %v156_v1 = vld [vmem:[%s261_s0] sm:$0xff]  ;;  %76 = vmatpush.bf16.msra.mxu0 %v160_v0  ;;  %184 = vmatpush.bf16.msra.mxu1 %v160_v0  ;;  %v159_v4 = vld [vmem:[%s261_s0 + $0x18] sm:$0xff] }
   0x3   :  { %8 = vsyncpa [#allocation3], 0  ;;  %185 = vmatpush.bf16.msra.mxu2 %v160_v0  ;;  %186 = vmatpush.bf16.msra.mxu3 %v160_v0  ;;  %v190_v7 = vld [vmem:[%s263_s2] ss:$0 sm:$0xff]  ;;  %s217_s0 = smov [#allocation2]   ;;  %s120_s2 = sshll.u32 %s264_s3, 4  ;;  %s121_s2 = int_to_ptr.hbm [resolvable:$true] %s120_s2 }
   0x4   :  { %s118_s23 = sshll.u32 %s217_s0, 4  ;;  %s218_s26 = smov 64   ;;  %s119_s23 = int_to_ptr.vmem [resolvable:$true] %s118_s23 }
   0x5   :  { %152 = vmatmul.msk.bf16.vlgmr.msra.gmra.mxu0 %vm56_vm0, %v156_v1  ;;  %153 = vmatmul.msk.bf16.vlgmr.msra.gmra.mxu1 %vm56_vm0, %v157_v2  ;;  %s219_s27 = smov 4  }
   0x6   :  { %154 = vmatmul.msk.bf16.vlgmr.msra.gmra.mxu2 %vm56_vm0, %v158_v3  ;;  %155 = vmatmul.msk.bf16.vlgmr.msra.gmra.mxu3 %vm56_vm0, %v159_v4 }
  0x82   :  { %v78_v5 = vpop.f32.mrf.mxu0  ;;  %v83_v6 = vpop.f32.mrf.mxu1 }
  0x83   :  { %v79_v12 = vadd.f32 %v190_v7, %v78_v5  ;;  %v84_v13 = vadd.f32 %v190_v7, %v83_v6 }
  0x89   :  { %v88_v8 = vpop.f32.mrf.mxu2  ;;  %v93_v9 = vpop.f32.mrf.mxu3 }
  0x8a   :  { %v80_v10 = vpop.f32.mrf.mxu0  ;;  %v85_v11 = vpop.f32.mrf.mxu1  ;;  %v89_v20 = vadd.f32 %v190_v7, %v88_v8  ;;  %v94_v21 = vadd.f32 %v190_v7, %v93_v9 }
  0x8b   :  { %v81_v14 = vadd.f32 %v190_v7, %v80_v10  ;;  %v86_v15 = vadd.f32 %v190_v7, %v85_v11 }
  0x8d   :  { %v164_v16 = vpack.c.bf16 %v81_v14, %v79_v12  ;;  %v169_v17 = vpack.c.bf16 %v86_v15, %v84_v13 }
  0x8f   :  { %165 = vst [vmem:[#allocation2] sm:$0xff] %v164_v16  }
  0x90   :  { %181 = vst [vmem:[#allocation2 + $0x8] sm:$0xff] %v169_v17  }
  0x91   :  { %v90_v18 = vpop.f32.mrf.mxu2  ;;  %v95_v19 = vpop.f32.mrf.mxu3 }
  0x92   :  { %v91_v22 = vadd.f32 %v190_v7, %v90_v18  ;;  %v96_v23 = vadd.f32 %v190_v7, %v95_v19 }
  0x94   :  { %v174_v24 = vpack.c.bf16 %v91_v22, %v89_v20  ;;  %v179_v25 = vpack.c.bf16 %v96_v23, %v94_v21 }
  0x96   :  { %182 = vst [vmem:[#allocation2 + $0x10] sm:$0xff] %v174_v24  }
  0x97   :  { %183 = vst [vmem:[#allocation2 + $0x18] sm:$0xff] %v179_v25  }
  0x98   :  { %126 = dma.vmem_to_hbm [thread:$0]  %s119_s23, 512, %s121_s2, [#allocation3], %s218_s26, %s218_s26, %s219_s27  }
  0x99   :  { %215 = dma.done.wait [#allocation3], 512  }
  0x9a   :  { %216 = vsyncadd [#allocation3], 4294966784 }
  0x9b   :  { %131 = vsyncpa [#allocation3], 1 }

</bundles_post_ra>
